<compile_context>
chip_gen: v5e
topology: v5e:2x2
jax: 0.10.0
libtpu: 0.0.40
codegen_flags: <defaults>
</compile_context>

<pallas_src>
import functools

import jax
import jax.numpy as jnp
from jax.experimental import pallas as pl
from jax.experimental.pallas import tpu as pltpu

INPUT_SIZE = 77
HIDDEN1_SIZE = 39
HIDDEN2_SIZE = 19
HIDDEN_SIZE = 9

PACK = 128        # lane-dense padded width for activations / packed weights
OUT_PAD = 16      # narrow output width (>= 9); wrapper slices [:, :9]
BIAS_ROW = 120    # sublane-aligned row holding the bias (>= 77, multiple of 8)


def _round_up(x, m):
    return ((x + m - 1) // m) * m


def pack_params(params, compute_dtype=jnp.float32):
    """Pack (w1,b1,w2,b2,w3,b3) into one (3, 128, 128) slab.

    Layer i: weights at [i, :K_i, :N_i], bias at [i, BIAS_ROW, :N_i];
    everything else is zero.  Because padded activation columns are zero
    (in particular column BIAS_ROW: cols >= 77 of the padded input are zeroed
    in-kernel, and cols >= 39 / >= 19 of h1 / h2 are tanh(0)=0), the
    zero-padded 128-wide contraction is exact and the bias is added
    explicitly from its row.  Keep this invariant if OUT_PAD is changed.
    """
    w1, b1, w2, b2, w3, b3 = params

    def layer(w, b):
        k, n = w.shape
        m = jnp.zeros((PACK, PACK), jnp.float32)
        m = m.at[:k, :n].set(w.astype(jnp.float32))
        m = m.at[BIAS_ROW, :n].set(b.reshape(-1).astype(jnp.float32))
        return m

    packed = jnp.stack([layer(w1, b1), layer(w2, b2), layer(w3, b3)])
    return packed.astype(compute_dtype)


def _encoder_kernel(x_ref, p_ref, o_ref, xpad_ref, *, compute_dtype):
    # x_ref:    (tb, 77)          input tile (any float dtype)
    # p_ref:    (3, 128, 128)     packed weights+bias, compute_dtype
    # o_ref:    (tb, OUT_PAD)     f32 output tile
    # xpad_ref: (tb, 128)         VMEM scratch for the lane-padded input

    # Lane-pad the input tile to 128 inside VMEM (cols 77:128 == 0, incl. the
    # bias column BIAS_ROW).  Re-zeroed every step: correct regardless of how
    # the "parallel" grid axis is split across cores.
    xpad_ref[...] = jnp.zeros_like(xpad_ref)
    xpad_ref[:, :INPUT_SIZE] = x_ref[...].astype(compute_dtype)
    x = xpad_ref[...]

    p1 = p_ref[0]
    p2 = p_ref[1]
    p3 = p_ref[2]
    b1 = p1[BIAS_ROW:BIAS_ROW + 1, :].astype(jnp.float32)   # (1, 128)
    b2 = p2[BIAS_ROW:BIAS_ROW + 1, :].astype(jnp.float32)
    b3 = p3[BIAS_ROW:BIAS_ROW + 1, :].astype(jnp.float32)

    # Layer 1: (tb,128) @ (128,128) -> f32 acc; tanh in f32 (EUP).
    h1 = jnp.tanh(jnp.dot(x, p1, preferred_element_type=jnp.float32) + b1)
    # Columns >= 39 of h1 are tanh(0 + 0) = 0, so the padded contraction is exact.
    h2 = jnp.tanh(
        jnp.dot(h1.astype(compute_dtype), p2, preferred_element_type=jnp.float32) + b2
    )
    out = jnp.dot(h2.astype(compute_dtype), p3, preferred_element_type=jnp.float32) + b3
    # Narrow store: only the first OUT_PAD lanes leave VMEM.
    o_ref[...] = out[:, :OUT_PAD].astype(o_ref.dtype)


@functools.partial(jax.jit, static_argnames=("block_b",))
def encoder_forward(x, packed_params, *, block_b=2048):
    """x: (B, ...) with prod(...) == 77 (flattened like x.view(B, 77))."""
    B = x.shape[0]
    compute_dtype = packed_params.dtype
    x2d = x.reshape(B, INPUT_SIZE)

    # Batch tile: multiple of 8; capped at ~ceil(B/2) so the grid has >= 2
    # programs whenever possible (lets v7x's two TensorCores both work;
    # negligible extra step cost on v5e/v6e).
    block_b = max(8, (int(block_b) // 8) * 8)
    b8 = _round_up(B, 8)
    half = _round_up((b8 + 1) // 2, 8)
    tb = min(block_b, max(8, half))
    bp = _round_up(b8, tb)

    if bp != B:
        x2d = jnp.pad(x2d, ((0, bp - B), (0, 0)))   # row pad only (no lane pad)

    # Advisory cost hint: real HBM bytes + MXU flops + tanh count.
    x_bytes = bp * INPUT_SIZE * x2d.dtype.itemsize
    p_bytes = int(packed_params.size) * packed_params.dtype.itemsize
    o_bytes = bp * OUT_PAD * 4
    cost = pl.CostEstimate(
        flops=2 * 3 * bp * PACK * PACK,
        transcendentals=2 * bp * PACK,
        bytes_accessed=x_bytes + p_bytes + o_bytes,
    )

    grid = (bp // tb,)
    out_padded = pl.pallas_call(
        functools.partial(_encoder_kernel, compute_dtype=compute_dtype),
        out_shape=jax.ShapeDtypeStruct((bp, OUT_PAD), jnp.float32),
        grid=grid,
        in_specs=[
            # 77 == full last dim -> legal narrow block; no wrapper lane pad.
            pl.BlockSpec((tb, INPUT_SIZE), lambda i: (i, 0)),
            # Params: constant index_map -> VMEM-resident across the grid.
            pl.BlockSpec((3, PACK, PACK), lambda i: (0, 0, 0)),
        ],
        out_specs=pl.BlockSpec((tb, OUT_PAD), lambda i: (i, 0)),
        scratch_shapes=[pltpu.VMEM((tb, PACK), compute_dtype)],
        compiler_params=pltpu.CompilerParams(
            dimension_semantics=("parallel",),        # v7x megacore split
            vmem_limit_bytes=32 * 1024 * 1024,        # headroom for big f32 tiles on v5e
        ),
        cost_estimate=cost,
    )(x2d, packed_params)

    return out_padded[:B, :HIDDEN_SIZE]


def _xavier_uniform(key, fan_in, fan_out):
    # matches torch.nn.init.xavier_uniform_ bound; stored as (in, out)
    bound = (6.0 / (fan_in + fan_out)) ** 0.5
    return jax.random.uniform(
        key, (fan_in, fan_out), dtype=jnp.float32, minval=-bound, maxval=bound
    )


def init_encoder_params(key):
    k1, k2, k3 = jax.random.split(key, 3)
    w1 = _xavier_uniform(k1, INPUT_SIZE, HIDDEN1_SIZE)
    b1 = jnp.zeros((1, HIDDEN1_SIZE), jnp.float32)
    w2 = _xavier_uniform(k2, HIDDEN1_SIZE, HIDDEN2_SIZE)
    b2 = jnp.zeros((1, HIDDEN2_SIZE), jnp.float32)
    w3 = _xavier_uniform(k3, HIDDEN2_SIZE, HIDDEN_SIZE)
    b3 = jnp.zeros((1, HIDDEN_SIZE), jnp.float32)
    return (w1, b1, w2, b2, w3, b3)


def encoder_reference(x, params):
    w1, b1, w2, b2, w3, b3 = params
    B = x.shape[0]
    h = x.reshape(B, INPUT_SIZE).astype(jnp.float32)
    h = jnp.tanh(h @ w1 + b1)
    h = jnp.tanh(h @ w2 + b2)
    return h @ w3 + b3


if __name__ == "__main__":
    key = jax.random.PRNGKey(0)
    k_param, k_x = jax.random.split(key)

    params = init_encoder_params(k_param)

    # --- small batch, f32 operands: exact vs reference --------------------
    batch = 8
    x = jax.random.normal(k_x, (batch, INPUT_SIZE), dtype=jnp.float32)

    packed_f32 = pack_params(params, jnp.float32)
    out = jax.block_until_ready(encoder_forward(x, packed_f32))
    ref = encoder_reference(x, params)
    assert out.shape == (batch, HIDDEN_SIZE), out.shape
    assert jnp.allclose(out, ref, atol=1e-5, rtol=1e-5), float(
        jnp.max(jnp.abs(out - ref))
    )

    # --- same batch, bf16 MXU operands (f32 accumulation / f32 tanh) ------
    packed_bf16 = pack_params(params, jnp.bfloat16)
    out_bf16 = jax.block_until_ready(encoder_forward(x, packed_bf16))
    assert jnp.allclose(out_bf16, ref, atol=3e-2, rtol=3e-2), float(
        jnp.max(jnp.abs(out_bf16 - ref))
    )

    # --- larger, non-divisible batch: exercises the tiled grid + padding ---
    big_b = 1000
    xb = jax.random.normal(jax.random.PRNGKey(1), (big_b, INPUT_SIZE), jnp.float32)
    ref_big = encoder_reference(xb, params)

    out_big = jax.block_until_ready(encoder_forward(xb, packed_f32))  # default tile
    assert out_big.shape == (big_b, HIDDEN_SIZE)
    assert jnp.allclose(out_big, ref_big, atol=1e-5, rtol=1e-5), float(
        jnp.max(jnp.abs(out_big - ref_big))
    )

    out_big2 = jax.block_until_ready(encoder_forward(xb, packed_f32, block_b=128))
    assert jnp.allclose(out_big2, ref_big, atol=1e-5, rtol=1e-5), float(
        jnp.max(jnp.abs(out_big2 - ref_big))
    )

    print("KERNEL_OK")
</pallas_src>

<mosaic_0001>
module attributes {stable_mosaic.version = 11 : i64} {
  func.func @_encoder_kernel(%arg0: i32, %arg1: memref<8x77xf32, #tpu.memory_space<vmem>>, %arg2: memref<3x128x128xf32, #tpu.memory_space<vmem>>, %arg3: memref<8x16xf32, #tpu.memory_space<vmem>>, %arg4: memref<8x128xf32, #tpu.memory_space<vmem>>) attributes {dimension_semantics = [#tpu.dimension_semantics<parallel>], iteration_bounds = array<i64: 1>, scalar_prefetch = 0 : i64, scratch_operands = 1 : i64, tpu.core_type = #tpu.core_type<tc>, window_params = [{transform_indices = @transform_0, window_bounds = array<i64: 8, 77>}, {pipeline_mode = #tpu.pipeline_mode<synchronous>, transform_indices = @transform_1, window_bounds = array<i64: 3, 128, 128>}, {transform_indices = @transform_2, window_bounds = array<i64: 8, 16>}]} {
    %cst = arith.constant 0.000000e+00 : f32
    %0 = vector.broadcast %cst : f32 to vector<8x128xf32>
    %c0 = arith.constant 0 : index
    %c0_0 = arith.constant 0 : index
    %1 = vector.load %arg4[%c0, %c0_0] : memref<8x128xf32, #tpu.memory_space<vmem>>, vector<8x128xf32>
    tpu.vector_store %arg4[%c0, %c0_0], %0 {strides = array<i32>} : memref<8x128xf32, #tpu.memory_space<vmem>>, vector<8x128xf32>,
    %c0_1 = arith.constant 0 : index
    %c0_2 = arith.constant 0 : index
    %2 = vector.load %arg1[%c0_1, %c0_2] : memref<8x77xf32, #tpu.memory_space<vmem>>, vector<8x77xf32>
    %c0_3 = arith.constant 0 : index
    %c0_4 = arith.constant 0 : index
    %3 = vector.load %arg4[%c0_3, %c0_4] : memref<8x128xf32, #tpu.memory_space<vmem>>, vector<8x77xf32>
    tpu.vector_store %arg4[%c0_3, %c0_4], %2 {strides = array<i32>} : memref<8x128xf32, #tpu.memory_space<vmem>>, vector<8x77xf32>,
    %c0_5 = arith.constant 0 : index
    %c0_6 = arith.constant 0 : index
    %4 = vector.load %arg4[%c0_5, %c0_6] : memref<8x128xf32, #tpu.memory_space<vmem>>, vector<8x128xf32>
    %c0_7 = arith.constant 0 : index
    %c0_8 = arith.constant 0 : index
    %c0_9 = arith.constant 0 : index
    %5 = vector.load %arg2[%c0_7, %c0_8, %c0_9] : memref<3x128x128xf32, #tpu.memory_space<vmem>>, vector<1x128x128xf32>
    %6 = vector.shape_cast %5 : vector<1x128x128xf32> to vector<128x128xf32>
    %c1 = arith.constant 1 : index
    %c0_10 = arith.constant 0 : index
    %c0_11 = arith.constant 0 : index
    %7 = vector.load %arg2[%c1, %c0_10, %c0_11] : memref<3x128x128xf32, #tpu.memory_space<vmem>>, vector<1x128x128xf32>
    %8 = vector.shape_cast %7 : vector<1x128x128xf32> to vector<128x128xf32>
    %c2 = arith.constant 2 : index
    %c0_12 = arith.constant 0 : index
    %c0_13 = arith.constant 0 : index
    %9 = vector.load %arg2[%c2, %c0_12, %c0_13] : memref<3x128x128xf32, #tpu.memory_space<vmem>>, vector<1x128x128xf32>
    %10 = vector.shape_cast %9 : vector<1x128x128xf32> to vector<128x128xf32>
    %11 = vector.extract_strided_slice %6 {offsets = [120, 0], sizes = [1, 128], strides = [1, 1]} : vector<128x128xf32> to vector<1x128xf32>
    %12 = vector.extract_strided_slice %8 {offsets = [120, 0], sizes = [1, 128], strides = [1, 1]} : vector<128x128xf32> to vector<1x128xf32>
    %13 = vector.extract_strided_slice %10 {offsets = [120, 0], sizes = [1, 128], strides = [1, 1]} : vector<128x128xf32> to vector<1x128xf32>
    %cst_14 = arith.constant dense<0.000000e+00> : vector<8x128xf32>
    %14 = tpu.matmul %4, %6, %cst_14 {dimension_numbers = #tpu.dot_dimension_numbers<[1], [0], [0], [1], [0, 0, 1, 1], [], []>} : vector<8x128xf32>, vector<128x128xf32>, vector<8x128xf32> -> vector<8x128xf32>
    %15 = vector.broadcast %11 : vector<1x128xf32> to vector<8x128xf32>
    %16 = arith.addf %14, %15 : vector<8x128xf32>
    %17 = math.tanh %16 : vector<8x128xf32>
    %cst_15 = arith.constant dense<0.000000e+00> : vector<8x128xf32>
    %18 = tpu.matmul %17, %8, %cst_15 {dimension_numbers = #tpu.dot_dimension_numbers<[1], [0], [0], [1], [0, 0, 1, 1], [], []>} : vector<8x128xf32>, vector<128x128xf32>, vector<8x128xf32> -> vector<8x128xf32>
    %19 = vector.broadcast %12 : vector<1x128xf32> to vector<8x128xf32>
    %20 = arith.addf %18, %19 : vector<8x128xf32>
    %21 = math.tanh %20 : vector<8x128xf32>
    %cst_16 = arith.constant dense<0.000000e+00> : vector<8x128xf32>
    %22 = tpu.matmul %21, %10, %cst_16 {dimension_numbers = #tpu.dot_dimension_numbers<[1], [0], [0], [1], [0, 0, 1, 1], [], []>} : vector<8x128xf32>, vector<128x128xf32>, vector<8x128xf32> -> vector<8x128xf32>
    %23 = vector.broadcast %13 : vector<1x128xf32> to vector<8x128xf32>
    %24 = arith.addf %22, %23 : vector<8x128xf32>
    %25 = vector.extract_strided_slice %24 {offsets = [0, 0], sizes = [8, 16], strides = [1, 1]} : vector<8x128xf32> to vector<8x16xf32>
    %c0_17 = arith.constant 0 : index
    %c0_18 = arith.constant 0 : index
    %26 = vector.load %arg3[%c0_17, %c0_18] : memref<8x16xf32, #tpu.memory_space<vmem>>, vector<8x16xf32>
    tpu.vector_store %arg3[%c0_17, %c0_18], %25 {strides = array<i32>} : memref<8x16xf32, #tpu.memory_space<vmem>>, vector<8x16xf32>,
    return
  }
  func.func @transform_0(%arg0: i32) -> (i32, i32) {
    %c0_i32 = arith.constant 0 : i32
    %c0_i32_0 = arith.constant 0 : i32
    return %arg0, %c0_i32 : i32, i32
  }
  func.func @transform_1(%arg0: i32) -> (i32, i32, i32) {
    %c0_i32 = arith.constant 0 : i32
    %c0_i32_0 = arith.constant 0 : i32
    %c0_i32_1 = arith.constant 0 : i32
    %c0_i32_2 = arith.constant 0 : i32
    return %c0_i32, %c0_i32_0, %c0_i32_1 : i32, i32, i32
  }
  func.func @transform_2(%arg0: i32) -> (i32, i32) {
    %c0_i32 = arith.constant 0 : i32
    %c0_i32_0 = arith.constant 0 : i32
    return %arg0, %c0_i32 : i32, i32
  }
}

</mosaic_0001>

<bundles_post_ra>
// kernel: encoder_forward.1
= control target key start
LH: loop header
LB: loop body
LE: loop exit
PB: predicated region body
PF: predicated region fallthrough
CT: control target
= control target key end

     0   :  { %7 = vsyncpa [#allocation4], 0  ;;  %s308_s0 = inlined_call_operand.hbm [shape: f32[8,77], index: 0, kind: input, shape index: {}]   ;;  %s309_s1 = inlined_call_operand.hbm [shape: f32[3,128,128], index: 1, kind: input, shape index: {}]   ;;  %s310_s2 = inlined_call_operand.hbm [shape: f32[8,16], index: 2, kind: output, shape index: {}]  }
   0x1   :  { %8 = vsyncpa [#allocation7], 0 }
   0x2   :  { %9 = vsyncpa [#allocation5], 0  ;;  %s15_s11 = sshll.u32 %s308_s0, 4  ;;  %s270_s12 = smov [#allocation3]   ;;  %s16_s11 = int_to_ptr.hbm [resolvable:$true] %s15_s11 }
   0x3   :  { %s17_s13 = sshll.u32 %s270_s12, 4  ;;  %s25_s16 = sshll.u32 %s309_s1, 4  ;;  %s18_s13 = int_to_ptr.vmem [resolvable:$true] %s17_s13  ;;  %s26_s16 = int_to_ptr.hbm [resolvable:$true] %s25_s16 }
   0x4   :  { %20 = dma.hbm_to_vmem [thread:$0]  %s16_s11, 128, %s18_s13, [#allocation4]  }
   0x5   :  { %s271_s17 = smov [#allocation6]   ;;  %s272_s19 = smov 128  }
   0x6   :  { %s27_s18 = sshll.u32 %s271_s17, 4  ;;  %s273_s20 = smov 8   ;;  %s28_s18 = int_to_ptr.vmem [resolvable:$true] %s27_s18 }
   0x7   :  { %33 = dma.hbm_to_vmem [thread:$0]  %s26_s16, 6144, %s28_s18, [#allocation7], %s272_s19, %s272_s19, %s273_s20  }
   0x8   :  { %264 = dma.done.wait [#allocation4], 128  }
   0x9   :  { %265 = vsyncadd [#allocation4], 4294967168 }
   0xa   :  { %266 = dma.done.wait [#allocation7], 6144  }
   0xb   :  { %267 = vsyncadd [#allocation7], 4294961152  ;;  %v274_v0 = vmov 0.0   ;;  %v297_v1 = vld [vmem:[#allocation6 + $0x78] sm:$0xff]  ;;  %v61_v2 = vld [vmem:[#allocation6 + $0x70] sm:$0xff]  ;;  %vm44_vm0 = vcmask 629760  }
   0xc   :  { %42 = vst [vmem:[#allocation2] sm:$0xff] %v274_v0  ;;  %98 = vmatpush.msra.mxu0 %v297_v1  ;;  %v60_v3 = vld [vmem:[#allocation6 + $0x68] sm:$0xff]  ;;  %v59_v4 = vld [vmem:[#allocation6 + $0x60] sm:$0xff]  ;;  %v43_v5 = vld [vmem:[#allocation3] sm:$0xff]  ;;  %v97_v46 = vperm.slane %v297_v1, 0  ;;  %s275_s0 = smov [#allocation8]  }
   0xd   :  { %v300_v6 = vld [vmem:[#allocation6 + $0xf8] sm:$0xff]  ;;  %45 = vst.msk [vmem:[#allocation2] sm:$0xff] %vm44_vm0, %v43_v5  ;;  %v78_v8 = vld [vmem:[#allocation6 + $0xf0] sm:$0xff]  ;;  %v77_v9 = vld [vmem:[#allocation6 + $0xe8] sm:$0xff]  ;;  %s169_s1 = sshll.u32 %s275_s0, 4  ;;  %s171_s23 = sshll.u32 %s310_s2, 4  ;;  %s170_s1 = int_to_ptr.vmem [resolvable:$true] %s169_s1  ;;  %s172_s23 = int_to_ptr.hbm [resolvable:$true] %s171_s23 }
   0xe   :  { %99 = vmatpush.msra.mxu0 %v61_v2  ;;  %v58_v7 = vld [vmem:[#allocation6 + $0x58] sm:$0xff]  ;;  %120 = vmatpush.msra.mxu1 %v300_v6  ;;  %v57_v10 = vld [vmem:[#allocation6 + $0x50] sm:$0xff]  ;;  %v76_v11 = vld [vmem:[#allocation6 + $0xe0] sm:$0xff]  ;;  %v119_v55 = vperm.slane %v300_v6, 0  ;;  %vm162_vm1 = vcmask 130048  }
   0xf   :  { %v56_v12 = vld [vmem:[#allocation6 + $0x48] sm:$0xff]  ;;  %v75_v13 = vld [vmem:[#allocation6 + $0xd8] sm:$0xff]  ;;  %v55_v14 = vld [vmem:[#allocation6 + $0x40] sm:$0xff] }
  0x10   :  { %100 = vmatpush.msra.mxu0 %v60_v3  ;;  %121 = vmatpush.msra.mxu1 %v78_v8  ;;  %v74_v15 = vld [vmem:[#allocation6 + $0xd0] sm:$0xff]  ;;  %v54_v16 = vld [vmem:[#allocation6 + $0x38] sm:$0xff]  ;;  %v73_v17 = vld [vmem:[#allocation6 + $0xc8] sm:$0xff] }
  0x11   :  { %v53_v18 = vld [vmem:[#allocation6 + $0x30] sm:$0xff]  ;;  %v72_v19 = vld [vmem:[#allocation6 + $0xc0] sm:$0xff]  ;;  %v52_v20 = vld [vmem:[#allocation6 + $0x28] sm:$0xff] }
  0x12   :  { %101 = vmatpush.msra.mxu0 %v59_v4  ;;  %122 = vmatpush.msra.mxu1 %v77_v9  ;;  %v71_v21 = vld [vmem:[#allocation6 + $0xb8] sm:$0xff]  ;;  %v51_v22 = vld [vmem:[#allocation6 + $0x20] sm:$0xff]  ;;  %v70_v23 = vld [vmem:[#allocation6 + $0xb0] sm:$0xff] }
  0x13   :  { %v50_v24 = vld [vmem:[#allocation6 + $0x18] sm:$0xff]  ;;  %v69_v25 = vld [vmem:[#allocation6 + $0xa8] sm:$0xff]  ;;  %v49_v26 = vld [vmem:[#allocation6 + $0x10] sm:$0xff] }
  0x14   :  { %102 = vmatpush.msra.mxu0 %v58_v7  ;;  %123 = vmatpush.msra.mxu1 %v76_v11  ;;  %v48_v27 = vld [vmem:[#allocation6 + $0x8] sm:$0xff]  ;;  %v47_v28 = vld [vmem:[#allocation6] sm:$0xff]  ;;  %v46_v29 = vld [vmem:[#allocation2] sm:$0xff] }
  0x15   :  { %v68_v30 = vld [vmem:[#allocation6 + $0xa0] sm:$0xff]  ;;  %v67_v31 = vld [vmem:[#allocation6 + $0x98] sm:$0xff]  ;;  %v66_v32 = vld [vmem:[#allocation6 + $0x90] sm:$0xff] }
  0x16   :  { %103 = vmatpush.msra.mxu0 %v57_v10  ;;  %124 = vmatpush.msra.mxu1 %v75_v13  ;;  %v65_v33 = vld [vmem:[#allocation6 + $0x88] sm:$0xff]  ;;  %v64_v34 = vld [vmem:[#allocation6 + $0x80] sm:$0xff]  ;;  %v96_v35 = vld [vmem:[#allocation6 + $0x178] sm:$0xff] }
  0x17   :  { %v95_v36 = vld [vmem:[#allocation6 + $0x170] sm:$0xff]  ;;  %142 = vmatpush.msra.mxu2 %v96_v35  ;;  %v94_v37 = vld [vmem:[#allocation6 + $0x168] sm:$0xff]  ;;  %v93_v38 = vld [vmem:[#allocation6 + $0x160] sm:$0xff]  ;;  %v141_v59 = vperm.slane %v96_v35, 0 }
  0x18   :  { %104 = vmatpush.msra.mxu0 %v56_v12  ;;  %125 = vmatpush.msra.mxu1 %v74_v15  ;;  %v92_v39 = vld [vmem:[#allocation6 + $0x158] sm:$0xff]  ;;  %v91_v40 = vld [vmem:[#allocation6 + $0x150] sm:$0xff]  ;;  %v90_v41 = vld [vmem:[#allocation6 + $0x148] sm:$0xff] }
  0x19   :  { %143 = vmatpush.msra.mxu2 %v95_v36  ;;  %v89_v42 = vld [vmem:[#allocation6 + $0x140] sm:$0xff]  ;;  %v88_v43 = vld [vmem:[#allocation6 + $0x138] sm:$0xff]  ;;  %v87_v44 = vld [vmem:[#allocation6 + $0x130] sm:$0xff] }
  0x1a   :  { %105 = vmatpush.msra.mxu0 %v55_v14  ;;  %126 = vmatpush.msra.mxu1 %v73_v17  ;;  %v86_v45 = vld [vmem:[#allocation6 + $0x128] sm:$0xff]  ;;  %v85_v50 = vld [vmem:[#allocation6 + $0x120] sm:$0xff]  ;;  %v84_v51 = vld [vmem:[#allocation6 + $0x118] sm:$0xff] }
  0x1b   :  { %144 = vmatpush.msra.mxu2 %v94_v37  ;;  %v83_v52 = vld [vmem:[#allocation6 + $0x110] sm:$0xff]  ;;  %v82_v53 = vld [vmem:[#allocation6 + $0x108] sm:$0xff]  ;;  %v81_v54 = vld [vmem:[#allocation6 + $0x100] sm:$0xff] }
  0x1c   :  { %106 = vmatpush.msra.mxu0 %v54_v16  ;;  %127 = vmatpush.msra.mxu1 %v72_v19 }
  0x1d   :  { %145 = vmatpush.msra.mxu2 %v93_v38 }
  0x1e   :  { %107 = vmatpush.msra.mxu0 %v53_v18  ;;  %128 = vmatpush.msra.mxu1 %v71_v21 }
  0x1f   :  { %146 = vmatpush.msra.mxu2 %v92_v39 }
  0x20   :  { %108 = vmatpush.msra.mxu0 %v52_v20  ;;  %129 = vmatpush.msra.mxu1 %v70_v23 }
  0x21   :  { %147 = vmatpush.msra.mxu2 %v91_v40 }
  0x22   :  { %109 = vmatpush.msra.mxu0 %v51_v22  ;;  %130 = vmatpush.msra.mxu1 %v69_v25 }
  0x23   :  { %148 = vmatpush.msra.mxu2 %v90_v41 }
  0x24   :  { %110 = vmatpush.msra.mxu0 %v50_v24  ;;  %131 = vmatpush.msra.mxu1 %v68_v30 }
  0x25   :  { %149 = vmatpush.msra.mxu2 %v89_v42 }
  0x26   :  { %111 = vmatpush.msra.mxu0 %v49_v26  ;;  %132 = vmatpush.msra.mxu1 %v67_v31 }
  0x27   :  { %150 = vmatpush.msra.mxu2 %v88_v43 }
  0x28   :  { %112 = vmatpush.msra.mxu0 %v48_v27  ;;  %133 = vmatpush.msra.mxu1 %v66_v32 }
  0x29   :  { %151 = vmatpush.msra.mxu2 %v87_v44 }
  0x2a   :  { %113 = vmatpush.msra.mxu0 %v47_v28  ;;  %134 = vmatpush.msra.mxu1 %v65_v33 }
  0x2b   :  { %114 = vmatmul.f32.vlgmr.msra.gmra.mxu0 %v46_v29  ;;  %152 = vmatpush.msra.mxu2 %v86_v45 }
  0x2c   :  { %135 = vmatpush.msra.mxu1 %v64_v34 }
  0x2d   :  { %153 = vmatpush.msra.mxu2 %v85_v50 }
  0x2f   :  { %154 = vmatpush.msra.mxu2 %v84_v51 }
  0x31   :  { %155 = vmatpush.msra.mxu2 %v83_v52 }
  0x33   :  { %156 = vmatpush.msra.mxu2 %v82_v53 }
  0x35   :  { %157 = vmatpush.msra.mxu2 %v81_v54 }
  0xa8   :  { %v115_v47 = vpop.f32.mrf.mxu0 }
  0xa9   :  { %v116_v48 = vadd.f32 %v115_v47, %v97_v46 }
  0xab   :  { %188 = vtanh.f32 %v116_v48 }
  0xb1   :  { %v189_v49 = vpop.eup %188 }
  0xb2   :  { %136 = vmatmul.f32.vlgmr.msra.gmra.mxu1 %v189_v49 }
 0x12f   :  { %v137_v56 = vpop.f32.mrf.mxu1 }
 0x130   :  { %v138_v57 = vadd.f32 %v137_v56, %v119_v55 }
 0x132   :  { %190 = vtanh.f32 %v138_v57 }
 0x138   :  { %v191_v58 = vpop.eup %190 }
 0x139   :  { %158 = vmatmul.f32.vlgmr.msra.gmra.mxu2 %v191_v58 }
 0x1bc   :  { %v159_v60 = vpop.f32.mrf.mxu2 }
 0x1bd   :  { %v160_v61 = vadd.f32 %v159_v60, %v141_v59 }
 0x1bf   :  { %163 = vst.msk [vmem:[#allocation8] sm:$0xff] %vm162_vm1, %v160_v61 }
 0x1c0   :  { %174 = dma.vmem_to_hbm [thread:$0]  %s170_s1, 128, %s172_s23, [#allocation5]  }
 0x1c1   :  { %268 = dma.done.wait [#allocation5], 128  }
 0x1c2   :  { %269 = vsyncadd [#allocation5], 4294967168 }
 0x1c3   :  { %179 = vsyncpa [#allocation4], 1 }
 0x1c4   :  { %180 = vsyncpa [#allocation7], 1 }
 0x1c5   :  { %181 = vsyncpa [#allocation5], 1 }

</bundles_post_ra>
